<compile_context>
chip_gen: v6e
topology: v6e:2x2x1
jax: 0.10.0
libtpu: 0.0.40
codegen_flags: <defaults>
</compile_context>

<pallas_src>
import numpy as np
import jax
import jax.numpy as jnp
from jax import lax
from jax.experimental import pallas as pl
from jax.experimental.pallas import tpu as pltpu

_TARGET_BLOCK_BYTES = 4 * 1024 * 1024   # ~4 MiB per streamed operand per grid step
_VMEM_LIMIT_BYTES = 32 * 1024 * 1024    # 3 ops x 2 bufs x 4 MiB = 24 MiB fits
# pl.reciprocal(approx=True) saves an EUP op on v7x but its ~2^-12 relative error
# can break tight tolerances for tiny variances; keep the exact form by default.
_APPROX_RECIPROCAL = False


def extract_feature_map(io_dict, feature_map_config):
    return io_dict[feature_map_config['path']][feature_map_config['io']]


def _round_up(x, m):
    return ((x + m - 1) // m) * m


def _cdiv(a, b):
    return -(-a // b)


def _row_gran(*dtypes):
    """Sublane granularity for non-full row blocks (8 f32 / 16 bf16 / 32 int8)."""
    itemsize = min(jnp.dtype(d).itemsize for d in dtypes)
    return {4: 8, 2: 16, 1: 32}.get(int(itemsize), 8)


def _pick_row_tile(rows, lane, gran):
    """Pick (row_tile, grid): ~_TARGET_BLOCK_BYTES blocks, grid >= 2 when possible."""
    tr_max = max(gran, (_TARGET_BLOCK_BYTES // (lane * 4)) // gran * gran)
    if rows < 2 * gran:
        return rows, 1                              # single full-extent block
    tr = min(tr_max, _round_up(_cdiv(rows, 2), gran))
    tr = max(gran, tr)
    return tr, _cdiv(rows, tr)


# --------------------------------------------------------------------------
# Kernel 1: element-wise variance (var.shape broadcasts to mean.shape trivially)
# Streams mean / var / teacher as (rows, lane) tiles; emits per-step partial sums
# of  d*d/var + log(var)   (the 0.5 and 1/numel live in the external scale).
# --------------------------------------------------------------------------
def _vid_elementwise_pair_sum(mean2d, var2d, teacher2d):
    rows, lane = mean2d.shape
    gran = _row_gran(mean2d.dtype, var2d.dtype, teacher2d.dtype)
    tr, grid = _pick_row_tile(rows, lane, gran)
    need_mask = (grid * tr != rows)

    def kernel(m_ref, v_ref, t_ref, o_ref):
        m = m_ref[...].astype(jnp.float32)
        v = v_ref[...].astype(jnp.float32)
        t = t_ref[...].astype(jnp.float32)
        d = m - t
        nlp = d * d * pl.reciprocal(v, approx=_APPROX_RECIPROCAL) + jnp.log(v)
        if need_mask:      # mask garbage rows of the partial last grid block
            row0 = pl.program_id(0) * tr
            rid = lax.broadcasted_iota(jnp.int32, (tr, 1), 0) + row0
            nlp = jnp.where(rid < rows, nlp, 0.0)
        o_ref[0, 0, :] = jnp.sum(nlp, axis=0)

    out = pl.pallas_call(
        kernel,
        out_shape=jax.ShapeDtypeStruct((grid, 1, lane), jnp.float32),
        grid=(grid,),
        in_specs=[pl.BlockSpec((tr, lane), lambda i: (i, 0)),
                  pl.BlockSpec((tr, lane), lambda i: (i, 0)),
                  pl.BlockSpec((tr, lane), lambda i: (i, 0))],
        out_specs=pl.BlockSpec((1, 1, lane), lambda i: (i, 0, 0)),
        compiler_params=pltpu.CompilerParams(
            dimension_semantics=("parallel",),
            vmem_limit_bytes=_VMEM_LIMIT_BYTES),
    )(mean2d, var2d, teacher2d)
    return jnp.sum(out)


# --------------------------------------------------------------------------
# Kernel 2: row-constant variance (per-channel style).  mean/teacher are
# (rows, trailing) with var constant along each row; a tiny (rows, 1) 1/var
# vector is streamed instead of a full-size broadcast.  Emits partial sums of
# d*d * inv_var; the log(var) term is finished outside on the small array.
# --------------------------------------------------------------------------
def _vid_rowvar_pair_sum(mean2d, inv_rows, teacher2d):
    rows, lane = mean2d.shape
    gran = _row_gran(mean2d.dtype, teacher2d.dtype)
    tr, grid = _pick_row_tile(rows, lane, gran)
    need_mask = (grid * tr != rows)

    def kernel(m_ref, iv_ref, t_ref, o_ref):
        m = m_ref[...].astype(jnp.float32)
        t = t_ref[...].astype(jnp.float32)
        iv = iv_ref[...]                       # (tr, 1) f32, lane-broadcast below
        d = m - t
        term = d * d * iv
        if need_mask:
            row0 = pl.program_id(0) * tr
            rid = lax.broadcasted_iota(jnp.int32, (tr, 1), 0) + row0
            term = jnp.where(rid < rows, term, 0.0)
        o_ref[0, 0, :] = jnp.sum(term, axis=0)

    out = pl.pallas_call(
        kernel,
        out_shape=jax.ShapeDtypeStruct((grid, 1, lane), jnp.float32),
        grid=(grid,),
        in_specs=[pl.BlockSpec((tr, lane), lambda i: (i, 0)),
                  pl.BlockSpec((tr, 1), lambda i: (i, 0)),
                  pl.BlockSpec((tr, lane), lambda i: (i, 0))],
        out_specs=pl.BlockSpec((1, 1, lane), lambda i: (i, 0, 0)),
        compiler_params=pltpu.CompilerParams(
            dimension_semantics=("parallel",),
            vmem_limit_bytes=_VMEM_LIMIT_BYTES),
    )(mean2d, inv_rows, teacher2d)
    return jnp.sum(out)


# --------------------------------------------------------------------------
# Per-pair dispatch
# --------------------------------------------------------------------------
def _vid_pair_loss(pred_mean, pred_var, teacher, factor):
    numel = int(np.prod(pred_mean.shape))
    factor = float(factor)
    aligned = (1,) * (pred_mean.ndim - pred_var.ndim) + tuple(pred_var.shape)

    if aligned != tuple(pred_mean.shape):
        # Broadcast variance.  Typical VID case: var is (1, C, 1, 1)-like, i.e.
        # constant over all trailing dims after its last non-singleton dim.
        nz = [i for i, s in enumerate(aligned) if s != 1]
        split = (nz[-1] + 1) if nz else 0
        trailing = int(np.prod(pred_mean.shape[split:])) if split < pred_mean.ndim else 1
        if nz and trailing >= 8:
            rows = numel // trailing
            m2 = jnp.reshape(pred_mean, (rows, trailing))       # free reshape
            t2 = jnp.reshape(teacher, (rows, trailing))         # free reshape
            v_lead = jnp.reshape(pred_var, aligned[:split]).astype(jnp.float32)
            inv_rows = jnp.broadcast_to(1.0 / v_lead,
                                        pred_mean.shape[:split]).reshape(rows, 1)
            quad_sum = _vid_rowvar_pair_sum(m2, inv_rows, t2)
            log_mean = jnp.mean(jnp.log(pred_var.astype(jnp.float32)))
            return factor * (0.5 / numel) * quad_sum + factor * 0.5 * log_mean
        # TODO(synk): scalar / leading-axis-only broadcast variances fall back to
        # a full materialization; could be handled with a constant-index var block.
        pred_var = jnp.broadcast_to(jnp.reshape(pred_var, aligned), pred_mean.shape)

    # Element-wise variance path: flatten to a lane-dense (rows, L) view.
    lane = next((L for L in (512, 256, 128) if numel % L == 0), None)
    pad = 0
    if lane is None:
        # TODO(synk): numel not a multiple of 128 forces a small loss-neutral pad
        # copy for this pair; could be avoided with an element-index mask.
        lane = 512
        pad = _round_up(numel, lane) - numel
    rows = (numel + pad) // lane

    def to2d(x, pad_value):
        flat = jnp.ravel(x)
        if pad:
            flat = jnp.pad(flat, (0, pad), constant_values=pad_value)
        return jnp.reshape(flat, (rows, lane))

    # Loss-neutral pad (mean = teacher = 0, var = 1) so padded elements add 0.
    total = _vid_elementwise_pair_sum(to2d(pred_mean, 0), to2d(pred_var, 1),
                                      to2d(teacher, 0))
    return factor * (0.5 / numel) * total


class VIDLoss:
    """JAX/Pallas port of torchdistill VIDLoss forward."""

    def __init__(self, feature_pairs, **kwargs):
        self.feature_pairs = feature_pairs

    def __call__(self, student_io_dict, teacher_io_dict, *args, **kwargs):
        vid_loss = jnp.float32(0.0)
        for pair_name, pair_config in self.feature_pairs.items():
            pred_mean, pred_var = extract_feature_map(
                student_io_dict, pair_config['student'])
            teacher_feature_map = extract_feature_map(
                teacher_io_dict, pair_config['teacher'])
            factor = pair_config.get('factor', 1)
            vid_loss = vid_loss + _vid_pair_loss(pred_mean, pred_var,
                                                 teacher_feature_map, factor)
        return vid_loss


# ---------------- pure-JAX reference (for correctness check) ----------------
def _ref_loss(feature_pairs, student_io_dict, teacher_io_dict):
    total = jnp.float32(0.0)
    for _, cfg in feature_pairs.items():
        pm, pv = extract_feature_map(student_io_dict, cfg['student'])
        t = extract_feature_map(teacher_io_dict, cfg['teacher'])
        pm = pm.astype(jnp.float32)
        t = t.astype(jnp.float32)
        pv = jnp.broadcast_to(pv, pm.shape).astype(jnp.float32)
        nlp = 0.5 * ((pm - t) ** 2 / pv + jnp.log(pv))
        total = total + cfg.get('factor', 1) * jnp.mean(nlp)
    return total


if __name__ == "__main__":
    key = jax.random.PRNGKey(0)
    ks = jax.random.split(key, 6)
    B = 2

    # Pair 1: feature map (B, 4, 16, 16); per-element predicted variance.
    t1 = jax.random.normal(ks[0], (B, 4, 16, 16), jnp.float32)
    m1 = jax.random.normal(ks[1], (B, 4, 16, 16), jnp.float32)
    v1 = jax.nn.softplus(jax.random.normal(ks[2], (B, 4, 16, 16), jnp.float32)) + 1e-6

    # Pair 2: feature map (B, 8, 8, 8); per-channel predicted variance (broadcast).
    t2 = jax.random.normal(ks[3], (B, 8, 8, 8), jnp.float32)
    m2 = jax.random.normal(ks[4], (B, 8, 8, 8), jnp.float32)
    v2 = jax.nn.softplus(jax.random.normal(ks[5], (1, 8, 1, 1), jnp.float32)) + 1e-6

    student_io_dict = {
        'regressor1': {'output': (m1, v1)},
        'regressor2': {'output': (m2, v2)},
    }
    teacher_io_dict = {
        'layer1': {'output': t1},
        'layer2': {'output': t2},
    }

    feature_pairs = {
        'pair1': {
            'student': {'io': 'output', 'path': 'regressor1'},
            'teacher': {'io': 'output', 'path': 'layer1'},
            'factor': 1.0,
        },
        'pair2': {
            'student': {'io': 'output', 'path': 'regressor2'},
            'teacher': {'io': 'output', 'path': 'layer2'},
            'factor': 0.5,
        },
    }

    loss_fn = VIDLoss(feature_pairs)
    loss = jax.block_until_ready(loss_fn(student_io_dict, teacher_io_dict))

    ref = jax.block_until_ready(_ref_loss(feature_pairs, student_io_dict, teacher_io_dict))
    np.testing.assert_allclose(np.asarray(loss), np.asarray(ref), rtol=1e-4, atol=1e-5)

    print("KERNEL_OK")
</pallas_src>

<mosaic_0001>
module attributes {stable_mosaic.version = 11 : i64} {
  func.func @kernel(%arg0: i32, %arg1: memref<4x512xf32, #tpu.memory_space<vmem>>, %arg2: memref<4x512xf32, #tpu.memory_space<vmem>>, %arg3: memref<4x512xf32, #tpu.memory_space<vmem>>, %arg4: memref<1x1x512xf32, #tpu.memory_space<vmem>>) attributes {dimension_semantics = [#tpu.dimension_semantics<parallel>], iteration_bounds = array<i64: 1>, scalar_prefetch = 0 : i64, scratch_operands = 0 : i64, tpu.core_type = #tpu.core_type<tc>, window_params = [{transform_indices = @transform_0, window_bounds = array<i64: 4, 512>}, {transform_indices = @transform_1, window_bounds = array<i64: 4, 512>}, {transform_indices = @transform_2, window_bounds = array<i64: 4, 512>}, {transform_indices = @transform_3, window_bounds = array<i64: 1, 1, 512>}]} {
    %c0 = arith.constant 0 : index
    %c0_0 = arith.constant 0 : index
    %0 = vector.load %arg1[%c0, %c0_0] : memref<4x512xf32, #tpu.memory_space<vmem>>, vector<4x512xf32>
    %c0_1 = arith.constant 0 : index
    %c0_2 = arith.constant 0 : index
    %1 = vector.load %arg2[%c0_1, %c0_2] : memref<4x512xf32, #tpu.memory_space<vmem>>, vector<4x512xf32>
    %c0_3 = arith.constant 0 : index
    %c0_4 = arith.constant 0 : index
    %2 = vector.load %arg3[%c0_3, %c0_4] : memref<4x512xf32, #tpu.memory_space<vmem>>, vector<4x512xf32>
    %3 = arith.subf %0, %2 : vector<4x512xf32>
    %4 = arith.mulf %3, %3 : vector<4x512xf32>
    %5 = tpu.reciprocal %1 : vector<4x512xf32> -> vector<4x512xf32>
    %6 = arith.mulf %4, %5 : vector<4x512xf32>
    %7 = math.log %1 : vector<4x512xf32>
    %8 = arith.addf %6, %7 : vector<4x512xf32>
    %cst = arith.constant dense<0.000000e+00> : vector<512xf32>
    %9 = vector.multi_reduction <add>, %8, %cst [0] : vector<4x512xf32> to vector<512xf32>
    %c0_5 = arith.constant 0 : index
    %c0_6 = arith.constant 0 : index
    %c0_7 = arith.constant 0 : index
    %10 = vector.load %arg4[%c0_5, %c0_6, %c0_7] : memref<1x1x512xf32, #tpu.memory_space<vmem>>, vector<1x1x512xf32>
    %11 = vector.shape_cast %10 : vector<1x1x512xf32> to vector<512xf32>
    %12 = vector.shape_cast %9 : vector<512xf32> to vector<1x1x512xf32>
    tpu.vector_store %arg4[%c0_5, %c0_6, %c0_7], %12 {strides = array<i32>} : memref<1x1x512xf32, #tpu.memory_space<vmem>>, vector<1x1x512xf32>,
    return
  }
  func.func @transform_0(%arg0: i32) -> (i32, i32) {
    %c0_i32 = arith.constant 0 : i32
    %c0_i32_0 = arith.constant 0 : i32
    return %arg0, %c0_i32 : i32, i32
  }
  func.func @transform_1(%arg0: i32) -> (i32, i32) {
    %c0_i32 = arith.constant 0 : i32
    %c0_i32_0 = arith.constant 0 : i32
    return %arg0, %c0_i32 : i32, i32
  }
  func.func @transform_2(%arg0: i32) -> (i32, i32) {
    %c0_i32 = arith.constant 0 : i32
    %c0_i32_0 = arith.constant 0 : i32
    return %arg0, %c0_i32 : i32, i32
  }
  func.func @transform_3(%arg0: i32) -> (i32, i32, i32) {
    %c0_i32 = arith.constant 0 : i32
    %c0_i32_0 = arith.constant 0 : i32
    %c0_i32_1 = arith.constant 0 : i32
    return %arg0, %c0_i32, %c0_i32_0 : i32, i32, i32
  }
}

</mosaic_0001>

<bundles_post_ra>
// kernel: tpu_custom_call.1
= control target key start
LH: loop header
LB: loop body
LE: loop exit
PB: predicated region body
PF: predicated region fallthrough
CT: control target
= control target key end

     0   :  { %8 = vsyncpa [#allocation3], 0  ;;  %s291_s0 = inlined_call_operand.hbm [shape: f32[4,512], index: 0, kind: input, shape index: {}]   ;;  %s292_s1 = inlined_call_operand.hbm [shape: f32[4,512], index: 1, kind: input, shape index: {}]   ;;  %s293_s2 = inlined_call_operand.hbm [shape: f32[4,512], index: 2, kind: input, shape index: {}]   ;;  %s294_s3 = inlined_call_operand.hbm [shape: f32[1,1,512], index: 3, kind: output, shape index: {}]  }
   0x1   :  { %9 = vsyncpa [#allocation6], 0 }
   0x2   :  { %10 = vsyncpa [#allocation4], 0  ;;  %s254_s12 = smov [#allocation5]   ;;  %s255_s14 = smov [#allocation2]  }
   0x3   :  { %s27_s13 = sshll.u32 %s254_s12, 4  ;;  %s17_s15 = sshll.u32 %s255_s14, 4  ;;  %s28_s13 = int_to_ptr.vmem [resolvable:$true] %s27_s13  ;;  %s18_s15 = int_to_ptr.vmem [resolvable:$true] %s17_s15 }
   0x4   :  { %s176_s16 = scalar_lea.vmem %s28_s13, 256  ;;  %p181_p1 = scmp.lt.s32.totalorder %s28_s13, %s28_s13 }
   0x5   :  { %p177_p0 = scmp.ne.s32.totalorder %s28_s13, %s176_s16  ;;  %p182_p2 = scmp.lt.s32.totalorder %s176_s16, %s176_s16 }
   0x7   :  { %p183_p3 = por %p182_p2, %p181_p1 }
   0x9   :  { %p184_p4 = pnand %p183_p3, %p177_p0 }
   0xb   :  { %187 = shalt.err (!%p184_p4)
}
   0xc   :  { %30 = dma.hbm_to_vmem [thread:$0]  %s292_s1, 256, %s28_s13, [#allocation6]  }
   0xd   :  { %s196_s19 = scalar_lea.vmem %s18_s15, 256  ;;  %p201_p6 = scmp.lt.s32.totalorder %s18_s15, %s18_s15 }
   0xe   :  { %p197_p5 = scmp.ne.s32.totalorder %s18_s15, %s196_s19  ;;  %p202_p7 = scmp.lt.s32.totalorder %s196_s19, %s196_s19 }
  0x10   :  { %p203_p8 = por %p202_p7, %p201_p6 }
  0x12   :  { %p204_p9 = pnand %p203_p8, %p197_p5 }
  0x14   :  { %207 = shalt.err (!%p204_p9)
}
  0x15   :  { %20 = dma.hbm_to_vmem [thread:$0]  %s291_s0, 256, %s18_s15, [#allocation3]  }
  0x16   :  { %s256_s22 = smov [#allocation7]  }
  0x17   :  { %s37_s23 = sshll.u32 %s256_s22, 4  ;;  %s38_s23 = int_to_ptr.vmem [resolvable:$true] %s37_s23 }
  0x18   :  { %s216_s24 = scalar_lea.vmem %s38_s23, 256  ;;  %p221_p11 = scmp.lt.s32.totalorder %s38_s23, %s38_s23 }
  0x19   :  { %p217_p10 = scmp.ne.s32.totalorder %s38_s23, %s216_s24  ;;  %p222_p12 = scmp.lt.s32.totalorder %s216_s24, %s216_s24 }
  0x1b   :  { %p223_p13 = por %p222_p12, %p221_p11 }
  0x1d   :  { %p224_p0 = pnand %p223_p13, %p217_p10 }
  0x1f   :  { %227 = shalt.err (!%p224_p0)
}
  0x20   :  { %40 = dma.hbm_to_vmem [thread:$0]  %s293_s2, 256, %s38_s23, [#allocation6]  }
  0x21   :  { %248 = dma.done.wait [#allocation3], 256  }
  0x22   :  { %249 = vsyncadd [#allocation3], 4294967040 }
  0x23   :  { %250 = dma.done.wait [#allocation6], 512  }
  0x24   :  { %251 = vsyncadd [#allocation6], 4294966784  ;;  %v52_v0 = vld [vmem:[#allocation5] sm:$0xff]  ;;  %v53_v1 = vld [vmem:[#allocation5 + $0x8] sm:$0xff]  ;;  %vm76_vm0 = vcmask 1043456   ;;  %v114_v36 = vlaneseq  ;;  %s258_s0 = smov [#allocation8]  }
  0x25   :  { %160 = vrcp.f32 %v52_v0  ;;  %v50_v2 = vld [vmem:[#allocation2] sm:$0xff]  ;;  %v51_v4 = vld [vmem:[#allocation2 + $0x8] sm:$0xff]  ;;  %v257_v34 = vmov 1966171168   ;;  %s145_s2 = sshll.u32 %s258_s0, 4  ;;  %s146_s2 = int_to_ptr.vmem [resolvable:$true] %s145_s2 }
  0x26   :  { %162 = vrcp.f32 %v53_v1  ;;  %v54_v3 = vld [vmem:[#allocation7] sm:$0xff]  ;;  %v55_v5 = vld [vmem:[#allocation7 + $0x8] sm:$0xff]  ;;  %v112_v35 = vunpack.c.l.s4 %v257_v34  ;;  %v115_v46 = vshrl.u32 %v114_v36, 7  ;;  %vm136_vm1 = vcmp.lt.s32.totalorder %v114_v36, 512  ;;  %s228_s26 = scalar_lea.vmem %s146_s2, 64  ;;  %p233_p2 = scmp.lt.s32.totalorder %s146_s2, %s146_s2 }
  0x27   :  { %164 = vlog2.f32 %v52_v0  ;;  %v56_v6 = vsub.f32 %v50_v2, %v54_v3  ;;  %v57_v7 = vsub.f32 %v51_v4, %v55_v5  ;;  %p229_p1 = scmp.ne.s32.totalorder %s146_s2, %s228_s26  ;;  %p234_p3 = scmp.lt.s32.totalorder %s228_s26, %s228_s26 }
  0x28   :  { %166 = vlog2.f32 %v53_v1  ;;  %v113_v45 = vunpack.c.0.s8 %v112_v35 }
  0x29   :  { %v58_v8 = vmul.f32 %v56_v6, %v56_v6  ;;  %v59_v9 = vmul.f32 %v57_v7, %v57_v7  ;;  %p235_p4 = por %p234_p3, %p233_p2 }
  0x2a   :  { %v116_v54 = vsub.s32 %v113_v45, %v115_v46 }
  0x2b   :  { %p236_p5 = pnand %p235_p4, %p229_p1 }
  0x32   :  { %v161_v10 = vpop.eup %160 }
  0x33   :  { %v163_v11 = vpop.eup %162  ;;  %v62_v12 = vmul.f32 %v161_v10, %v58_v8 }
  0x34   :  { %v165_v13 = vpop.eup %164  ;;  %v63_v14 = vmul.f32 %v163_v11, %v59_v9 }
  0x35   :  { %v167_v15 = vpop.eup %166  ;;  %v65_v16 = vmul.f32 0.6931472, %v165_v13 }
  0x36   :  { %v67_v17 = vmul.f32 0.6931472, %v167_v15 }
  0x37   :  { %v68_v18 = vadd.f32 %v65_v16, %v62_v12 }
  0x38   :  { %v69_v19 = vadd.f32 %v67_v17, %v63_v14 }
  0x39   :  { %v72_v20 = vcombine.high %v68_v18, %v68_v18  ;;  %v77_v21 = vsel %vm76_vm0, %v68_v18, 0.0 }
  0x3a   :  { %v73_v22 = vcombine.high %v69_v19, %v69_v19  ;;  %v78_v23 = vrot.slane %v77_v21, 4  ;;  %v91_v24 = vsel %vm76_vm0, %v69_v19, 0.0 }
  0x3b   :  { %v84_v25 = vsel %vm76_vm0, %v72_v20, 0.0  ;;  %v92_v26 = vrot.slane %v91_v24, 4 }
  0x3c   :  { %v79_v27 = vadd.f32 %v78_v23, %v77_v21  ;;  %v85_v28 = vrot.slane %v84_v25, 4  ;;  %v98_v29 = vsel %vm76_vm0, %v73_v22, 0.0 }
  0x3d   :  { %v93_v30 = vadd.f32 %v92_v26, %v91_v24  ;;  %v99_v31 = vrot.slane %v98_v29, 4 }
  0x3e   :  { %v80_v32 = vrot.slane %v79_v27, 2  ;;  %v86_v33 = vadd.f32 %v85_v28, %v84_v25 }
  0x3f   :  { %v94_v37 = vrot.slane %v93_v30, 2  ;;  %v100_v38 = vadd.f32 %v99_v31, %v98_v29 }
  0x40   :  { %v81_v39 = vadd.f32 %v80_v32, %v79_v27  ;;  %v87_v40 = vrot.slane %v86_v33, 2 }
  0x41   :  { %v95_v41 = vadd.f32 %v94_v37, %v93_v30  ;;  %v101_v42 = vrot.slane %v100_v38, 2 }
  0x42   :  { %v82_v43 = vrot.slane %v81_v39, 1  ;;  %v88_v44 = vadd.f32 %v87_v40, %v86_v33 }
  0x43   :  { %v96_v47 = vrot.slane %v95_v41, 1  ;;  %v102_v48 = vadd.f32 %v101_v42, %v100_v38 }
  0x44   :  { %v83_v49 = vadd.f32 %v82_v43, %v81_v39  ;;  %v89_v50 = vrot.slane %v88_v44, 1 }
  0x45   :  { %v97_v51 = vadd.f32 %v96_v47, %v95_v41  ;;  %v103_v52 = vrot.slane %v102_v48, 1 }
  0x46   :  { %v90_v53 = vadd.f32 %v89_v50, %v88_v44 }
  0x47   :  { %v104_v55 = vadd.f32 %v103_v52, %v102_v48 }
  0x48   :  { %v109_v56 = vcombine.low %v83_v49, %v90_v53 }
  0x49   :  { %v110_v57 = vcombine.low %v97_v51, %v104_v55 }
  0x4a   :  { %v117_v58 = vrot.slane %v109_v56, %v116_v54 }
  0x4b   :  { %v124_v59 = vrot.slane %v110_v57, %v116_v54 }
  0x4d   :  { %v125_v60 = vcombine.low %v117_v58, %v124_v59 }
  0x4f   :  { %v132_v61 = vrot.slane %v125_v60, %v116_v54 }
  0x51   :  { %138 = vst.msk [vmem:[#allocation8] sm:$0xf] %vm136_vm1, %v132_v61 }
  0x52   :  { %239 = shalt.err (!%p236_p5)
}
  0x53   :  { %148 = dma.vmem_to_hbm [thread:$0]  %s146_s2, 64, %s294_s3, [#allocation4]  }
  0x54   :  { %252 = dma.done.wait [#allocation4], 64  }
  0x55   :  { %253 = vsyncadd [#allocation4], 4294967232 }
  0x56   :  { %152 = vsyncpa [#allocation3], 1 }
  0x57   :  { %153 = vsyncpa [#allocation6], 1 }
  0x58   :  { %154 = vsyncpa [#allocation4], 1 }

</bundles_post_ra>
